<compile_context>
chip_gen: v7x
topology: tpu7x:2x2x1
jax: 0.10.0
libtpu: 0.0.40
codegen_flags: <defaults>
</compile_context>

<pallas_src>
import jax
import jax.numpy as jnp
from jax.experimental import pallas as pl
from jax.experimental.pallas import tpu as pltpu

N_INPUT_FEATURES = 23
HIDDEN = (5, 10, 20, 1)
LANE_TILE = 8192   # batch rows per grid step; multiple of 256.  First thing to sweep.


def _round_up(x: int, m: int) -> int:
    return ((x + m - 1) // m) * m


def _vmem_limit_bytes(tile: int) -> int:
    # Dominant term: double-buffered (tile, 23) input block, lane-padded to 128
    # lanes in VMEM (512 B/row).  Generous slack covers the transposed copy,
    # the (out, tile) activations, the (1, tile) output double-buffer and the
    # tiny weight tiles.
    return min(2048 * tile + (8 << 20), 100 << 20)


def mlp_kernel(x_ref, w1_ref, b1_ref, w2_ref, b2_ref, w3_ref, b3_ref,
               w4_ref, b4_ref, o_ref):
    # Natural (TB, 23) tile -> (23, TB): one XLU transpose puts the batch on the
    # 128-lane axis so every matmul / store below is lane-dense.
    h = x_ref[...].T                                                     # (23, TB)
    h = jnp.dot(w1_ref[...], h, preferred_element_type=jnp.float32) + b1_ref[...]
    h = jnp.maximum(h, 0.0)                                              # (5, TB)
    h = jnp.dot(w2_ref[...], h, preferred_element_type=jnp.float32) + b2_ref[...]
    h = jnp.maximum(h, 0.0)                                              # (10, TB)
    h = jnp.dot(w3_ref[...], h, preferred_element_type=jnp.float32) + b3_ref[...]
    h = jnp.maximum(h, 0.0)                                              # (20, TB)
    out = jnp.dot(w4_ref[...], h, preferred_element_type=jnp.float32) + b4_ref[...]
    o_ref[...] = out.astype(o_ref.dtype)                                 # (1, TB)


def prediccion_demanda_forward(x, params, *, lane_tile=LANE_TILE):
    """x: (B, 23) float32.  params: list of (W, b) with W=(in,out), b=(1,out)."""
    B, F = x.shape
    assert F == N_INPUT_FEATURES

    # Tiny weights: wrapper-side transposes are a few hundred bytes, negligible.
    w_ts = [w.T for (w, _) in params]           # (out, in)
    b_ts = [b.T for (_, b) in params]           # (out, 1)

    # Tile selection: keep a multiple of 256, clamp for small batches, and aim
    # for >= 2 roughly even tiles so v7x's two TensorCores both get work.
    tile = max(256, (int(lane_tile) // 256) * 256)
    tile = max(256, min(tile, _round_up(pl.cdiv(B, 2), 256)))

    b_pad = _round_up(B, tile)
    num_tiles = b_pad // tile
    # Pad only when needed (for very large batches, feed a tile-multiple batch
    # upstream to avoid this extra HBM pass entirely).
    x_in = x if b_pad == B else jnp.pad(x, ((0, b_pad - B), (0, 0)))

    # Constant block index => each weight/bias is DMA'd once and stays resident
    # in VMEM for the whole grid.
    const = lambda shape: pl.BlockSpec(shape, lambda i: (0, 0))

    out_t = pl.pallas_call(
        mlp_kernel,
        out_shape=jax.ShapeDtypeStruct((HIDDEN[-1], b_pad), jnp.float32),
        grid=(num_tiles,),
        in_specs=[
            pl.BlockSpec((tile, N_INPUT_FEATURES), lambda i: (i, 0)),
            const(w_ts[0].shape), const(b_ts[0].shape),
            const(w_ts[1].shape), const(b_ts[1].shape),
            const(w_ts[2].shape), const(b_ts[2].shape),
            const(w_ts[3].shape), const(b_ts[3].shape),
        ],
        out_specs=pl.BlockSpec((HIDDEN[-1], tile), lambda i: (0, i)),
        compiler_params=pltpu.CompilerParams(
            dimension_semantics=("parallel",),   # v7x: shard tiles over both TCs
            vmem_limit_bytes=_vmem_limit_bytes(tile)),
    )(x_in, w_ts[0], b_ts[0], w_ts[1], b_ts[1], w_ts[2], b_ts[2],
      w_ts[3], b_ts[3])

    # (1, b_pad) -> (B, 1); padded lanes are sliced off before they reach the caller.
    return out_t[:, :B].T


def init_params(key, n_in):
    """Deterministic init mimicking nn.Linear shapes (stored as (in, out))."""
    dims = (n_in,) + HIDDEN
    params = []
    for i in range(len(HIDDEN)):
        key, kw, kb = jax.random.split(key, 3)
        fan_in = dims[i]
        bound = 1.0 / jnp.sqrt(fan_in)
        W = jax.random.uniform(kw, (dims[i], dims[i + 1]), jnp.float32, -bound, bound)
        b = jax.random.uniform(kb, (1, dims[i + 1]), jnp.float32, -bound, bound)
        params.append((W, b))
    return params


def reference_forward(x, params):
    h = x
    for i, (W, b) in enumerate(params):
        h = h @ W + b
        if i < len(params) - 1:
            h = jnp.maximum(h, 0.0)
    return h


if __name__ == "__main__":
    key = jax.random.PRNGKey(0)
    kx, kp, kx2, kx3 = jax.random.split(key, 4)

    params = init_params(kp, N_INPUT_FEATURES)

    # Small batch: exercises the small-batch clamp (single 256-lane tile).
    B = 8
    x = jax.random.normal(kx, (B, N_INPUT_FEATURES), dtype=jnp.float32)
    out = jax.block_until_ready(prediccion_demanda_forward(x, params))
    ref = reference_forward(x, params)
    assert out.shape == (B, 1), out.shape
    assert jnp.allclose(out, ref, atol=1e-5, rtol=1e-5), "mismatch vs reference (B=8)"

    # Non-multiple batch: exercises the conditional pad + 2-tile grid.
    B2 = 300
    x2 = jax.random.normal(kx2, (B2, N_INPUT_FEATURES), dtype=jnp.float32)
    out2 = jax.block_until_ready(prediccion_demanda_forward(x2, params))
    ref2 = reference_forward(x2, params)
    assert out2.shape == (B2, 1), out2.shape
    assert jnp.allclose(out2, ref2, atol=1e-5, rtol=1e-5), "mismatch vs reference (B=300)"

    # Tile-divisible batch: no padding path, two even tiles (v7x megacore split).
    B3 = 1024
    x3 = jax.random.normal(kx3, (B3, N_INPUT_FEATURES), dtype=jnp.float32)
    out3 = jax.block_until_ready(prediccion_demanda_forward(x3, params))
    ref3 = reference_forward(x3, params)
    assert out3.shape == (B3, 1), out3.shape
    assert jnp.allclose(out3, ref3, atol=1e-5, rtol=1e-5), "mismatch vs reference (B=1024)"

    print("KERNEL_OK")
</pallas_src>

<mosaic_0001>
module attributes {stable_mosaic.version = 11 : i64} {
  func.func @mlp_kernel(%arg0: i32, %arg1: memref<256x23xf32, #tpu.memory_space<vmem>>, %arg2: memref<5x23xf32, #tpu.memory_space<vmem>>, %arg3: memref<5x1xf32, #tpu.memory_space<vmem>>, %arg4: memref<10x5xf32, #tpu.memory_space<vmem>>, %arg5: memref<10x1xf32, #tpu.memory_space<vmem>>, %arg6: memref<20x10xf32, #tpu.memory_space<vmem>>, %arg7: memref<20x1xf32, #tpu.memory_space<vmem>>, %arg8: memref<1x20xf32, #tpu.memory_space<vmem>>, %arg9: memref<1x1xf32, #tpu.memory_space<vmem>>, %arg10: memref<1x256xf32, #tpu.memory_space<vmem>>) attributes {dimension_semantics = [#tpu.dimension_semantics<parallel>], iteration_bounds = array<i64: 1>, scalar_prefetch = 0 : i64, scratch_operands = 0 : i64, tpu.core_type = #tpu.core_type<tc>, window_params = [{transform_indices = @transform_0, window_bounds = array<i64: 256, 23>}, {pipeline_mode = #tpu.pipeline_mode<synchronous>, transform_indices = @transform_1, window_bounds = array<i64: 5, 23>}, {pipeline_mode = #tpu.pipeline_mode<synchronous>, transform_indices = @transform_2, window_bounds = array<i64: 5, 1>}, {pipeline_mode = #tpu.pipeline_mode<synchronous>, transform_indices = @transform_3, window_bounds = array<i64: 10, 5>}, {pipeline_mode = #tpu.pipeline_mode<synchronous>, transform_indices = @transform_4, window_bounds = array<i64: 10, 1>}, {pipeline_mode = #tpu.pipeline_mode<synchronous>, transform_indices = @transform_5, window_bounds = array<i64: 20, 10>}, {pipeline_mode = #tpu.pipeline_mode<synchronous>, transform_indices = @transform_6, window_bounds = array<i64: 20, 1>}, {pipeline_mode = #tpu.pipeline_mode<synchronous>, transform_indices = @transform_7, window_bounds = array<i64: 1, 20>}, {pipeline_mode = #tpu.pipeline_mode<synchronous>, transform_indices = @transform_8, window_bounds = array<i64: 1, 1>}, {transform_indices = @transform_9, window_bounds = array<i64: 1, 256>}]} {
    %c0 = arith.constant 0 : index
    %c0_0 = arith.constant 0 : index
    %0 = vector.load %arg1[%c0, %c0_0] : memref<256x23xf32, #tpu.memory_space<vmem>>, vector<256x23xf32>
    %1 = tpu.transpose %0, [1, 0] : vector<256x23xf32> -> vector<23x256xf32>
    %c0_1 = arith.constant 0 : index
    %c0_2 = arith.constant 0 : index
    %2 = vector.load %arg2[%c0_1, %c0_2] : memref<5x23xf32, #tpu.memory_space<vmem>>, vector<5x23xf32>
    %cst = arith.constant dense<0.000000e+00> : vector<5x256xf32>
    %3 = tpu.matmul %2, %1, %cst {dimension_numbers = #tpu.dot_dimension_numbers<[1], [0], [0], [1], [0, 0, 1, 1], [], []>} : vector<5x23xf32>, vector<23x256xf32>, vector<5x256xf32> -> vector<5x256xf32>
    %c0_3 = arith.constant 0 : index
    %c0_4 = arith.constant 0 : index
    %4 = vector.load %arg3[%c0_3, %c0_4] : memref<5x1xf32, #tpu.memory_space<vmem>>, vector<5x1xf32>
    %5 = vector.broadcast %4 : vector<5x1xf32> to vector<5x256xf32>
    %6 = arith.addf %3, %5 : vector<5x256xf32>
    %cst_5 = arith.constant 0.000000e+00 : f32
    %7 = vector.broadcast %cst_5 : f32 to vector<5x256xf32>
    %8 = arith.maximumf %6, %7 : vector<5x256xf32>
    %c0_6 = arith.constant 0 : index
    %c0_7 = arith.constant 0 : index
    %9 = vector.load %arg4[%c0_6, %c0_7] : memref<10x5xf32, #tpu.memory_space<vmem>>, vector<10x5xf32>
    %cst_8 = arith.constant dense<0.000000e+00> : vector<10x256xf32>
    %10 = tpu.matmul %9, %8, %cst_8 {dimension_numbers = #tpu.dot_dimension_numbers<[1], [0], [0], [1], [0, 0, 1, 1], [], []>} : vector<10x5xf32>, vector<5x256xf32>, vector<10x256xf32> -> vector<10x256xf32>
    %c0_9 = arith.constant 0 : index
    %c0_10 = arith.constant 0 : index
    %11 = vector.load %arg5[%c0_9, %c0_10] : memref<10x1xf32, #tpu.memory_space<vmem>>, vector<10x1xf32>
    %12 = vector.broadcast %11 : vector<10x1xf32> to vector<10x256xf32>
    %13 = arith.addf %10, %12 : vector<10x256xf32>
    %cst_11 = arith.constant 0.000000e+00 : f32
    %14 = vector.broadcast %cst_11 : f32 to vector<10x256xf32>
    %15 = arith.maximumf %13, %14 : vector<10x256xf32>
    %c0_12 = arith.constant 0 : index
    %c0_13 = arith.constant 0 : index
    %16 = vector.load %arg6[%c0_12, %c0_13] : memref<20x10xf32, #tpu.memory_space<vmem>>, vector<20x10xf32>
    %cst_14 = arith.constant dense<0.000000e+00> : vector<20x256xf32>
    %17 = tpu.matmul %16, %15, %cst_14 {dimension_numbers = #tpu.dot_dimension_numbers<[1], [0], [0], [1], [0, 0, 1, 1], [], []>} : vector<20x10xf32>, vector<10x256xf32>, vector<20x256xf32> -> vector<20x256xf32>
    %c0_15 = arith.constant 0 : index
    %c0_16 = arith.constant 0 : index
    %18 = vector.load %arg7[%c0_15, %c0_16] : memref<20x1xf32, #tpu.memory_space<vmem>>, vector<20x1xf32>
    %19 = vector.broadcast %18 : vector<20x1xf32> to vector<20x256xf32>
    %20 = arith.addf %17, %19 : vector<20x256xf32>
    %cst_17 = arith.constant 0.000000e+00 : f32
    %21 = vector.broadcast %cst_17 : f32 to vector<20x256xf32>
    %22 = arith.maximumf %20, %21 : vector<20x256xf32>
    %c0_18 = arith.constant 0 : index
    %c0_19 = arith.constant 0 : index
    %23 = vector.load %arg8[%c0_18, %c0_19] : memref<1x20xf32, #tpu.memory_space<vmem>>, vector<1x20xf32>
    %cst_20 = arith.constant dense<0.000000e+00> : vector<1x256xf32>
    %24 = tpu.matmul %23, %22, %cst_20 {dimension_numbers = #tpu.dot_dimension_numbers<[1], [0], [0], [1], [0, 0, 1, 1], [], []>} : vector<1x20xf32>, vector<20x256xf32>, vector<1x256xf32> -> vector<1x256xf32>
    %c0_21 = arith.constant 0 : index
    %c0_22 = arith.constant 0 : index
    %25 = vector.load %arg9[%c0_21, %c0_22] : memref<1x1xf32, #tpu.memory_space<vmem>>, vector<1x1xf32>
    %26 = vector.broadcast %25 : vector<1x1xf32> to vector<1x256xf32>
    %27 = arith.addf %24, %26 : vector<1x256xf32>
    %c0_23 = arith.constant 0 : index
    %c0_24 = arith.constant 0 : index
    %28 = vector.load %arg10[%c0_23, %c0_24] : memref<1x256xf32, #tpu.memory_space<vmem>>, vector<1x256xf32>
    tpu.vector_store %arg10[%c0_23, %c0_24], %27 {strides = array<i32>} : memref<1x256xf32, #tpu.memory_space<vmem>>, vector<1x256xf32>,
    return
  }
  func.func @transform_0(%arg0: i32) -> (i32, i32) {
    %c0_i32 = arith.constant 0 : i32
    %c0_i32_0 = arith.constant 0 : i32
    return %arg0, %c0_i32 : i32, i32
  }
  func.func @transform_1(%arg0: i32) -> (i32, i32) {
    %c0_i32 = arith.constant 0 : i32
    %c0_i32_0 = arith.constant 0 : i32
    %c0_i32_1 = arith.constant 0 : i32
    return %c0_i32, %c0_i32_0 : i32, i32
  }
  func.func @transform_2(%arg0: i32) -> (i32, i32) {
    %c0_i32 = arith.constant 0 : i32
    %c0_i32_0 = arith.constant 0 : i32
    %c0_i32_1 = arith.constant 0 : i32
    return %c0_i32, %c0_i32_0 : i32, i32
  }
  func.func @transform_3(%arg0: i32) -> (i32, i32) {
    %c0_i32 = arith.constant 0 : i32
    %c0_i32_0 = arith.constant 0 : i32
    %c0_i32_1 = arith.constant 0 : i32
    return %c0_i32, %c0_i32_0 : i32, i32
  }
  func.func @transform_4(%arg0: i32) -> (i32, i32) {
    %c0_i32 = arith.constant 0 : i32
    %c0_i32_0 = arith.constant 0 : i32
    %c0_i32_1 = arith.constant 0 : i32
    return %c0_i32, %c0_i32_0 : i32, i32
  }
  func.func @transform_5(%arg0: i32) -> (i32, i32) {
    %c0_i32 = arith.constant 0 : i32
    %c0_i32_0 = arith.constant 0 : i32
    %c0_i32_1 = arith.constant 0 : i32
    return %c0_i32, %c0_i32_0 : i32, i32
  }
  func.func @transform_6(%arg0: i32) -> (i32, i32) {
    %c0_i32 = arith.constant 0 : i32
    %c0_i32_0 = arith.constant 0 : i32
    %c0_i32_1 = arith.constant 0 : i32
    return %c0_i32, %c0_i32_0 : i32, i32
  }
  func.func @transform_7(%arg0: i32) -> (i32, i32) {
    %c0_i32 = arith.constant 0 : i32
    %c0_i32_0 = arith.constant 0 : i32
    %c0_i32_1 = arith.constant 0 : i32
    return %c0_i32, %c0_i32_0 : i32, i32
  }
  func.func @transform_8(%arg0: i32) -> (i32, i32) {
    %c0_i32 = arith.constant 0 : i32
    %c0_i32_0 = arith.constant 0 : i32
    %c0_i32_1 = arith.constant 0 : i32
    return %c0_i32, %c0_i32_0 : i32, i32
  }
  func.func @transform_9(%arg0: i32) -> (i32, i32) {
    %c0_i32 = arith.constant 0 : i32
    %c0_i32_0 = arith.constant 0 : i32
    return %c0_i32, %arg0 : i32, i32
  }
}

</mosaic_0001>

<bundles_post_ra>
// kernel: tpu_custom_call.1
= control target key start
LH: loop header
LB: loop body
LE: loop exit
PB: predicated region body
PF: predicated region fallthrough
CT: control target
= control target key end

     0   :  { %s1026_s0 = inlined_call_operand.vmem [shape: f32[256,23], index: 0, kind: input, shape index: {}]   ;;  %s1027_s1 = inlined_call_operand.vmem [shape: f32[5,23], index: 1, kind: input, shape index: {}]   ;;  %s1028_s2 = inlined_call_operand.vmem [shape: f32[5,1], index: 2, kind: input, shape index: {}]   ;;  %s1029_s3 = inlined_call_operand.vmem [shape: f32[10,5], index: 3, kind: input, shape index: {}]   ;;  %s1030_s4 = inlined_call_operand.vmem [shape: f32[10,1], index: 4, kind: input, shape index: {}]   ;;  %s1031_s5 = inlined_call_operand.vmem [shape: f32[20,10], index: 5, kind: input, shape index: {}]   ;;  %s1032_s6 = inlined_call_operand.vmem [shape: f32[20,1], index: 6, kind: input, shape index: {}]   ;;  %s1033_s7 = inlined_call_operand.vmem [shape: f32[1,20], index: 7, kind: input, shape index: {}]   ;;  %s1034_s8 = inlined_call_operand.<no memory space> [shape: f32[1,1], index: 8, kind: input, shape index: {}]   ;;  %s1035_s9 = inlined_call_operand.hbm [shape: f32[1,256], index: 9, kind: output, shape index: {}]  }
   0x1   :  { %v14_v0 = vstv %s1034_s8 }
   0x2   :  { %15 = vst [vmem:[#allocation2] sm:$0x1] %v14_v0 }
   0x3   :  { %v51_v1 = vld [vmem:[%s1026_s0 + $0x80] sm:$0xff]  ;;  %v52_v2 = vld [vmem:[%s1026_s0 + $0x88] sm:$0xff]  ;;  %vm74_vm0 = vcmask 187392   ;;  %v53_v7 = vld [vmem:[%s1026_s0 + $0x90] sm:$0xff]  ;;  %v781_v8 = vmov 0  }
   0x4   :  { %v35_v3 = vld [vmem:[%s1026_s0] sm:$0xff]  ;;  %v692_v4 = vpack.c.bf16 %v52_v2, %v51_v1  ;;  %vm850_vm1 = vmpackc.low %vm74_vm0, %vm74_vm0  ;;  %v36_v6 = vld [vmem:[%s1026_s0 + $0x8] sm:$0xff]  ;;  %755 = vset.pattern.permute.xlu0 %v781_v8  ;;  %756 = vset.pattern.permute.xlu1 %v781_v8 }
   0x5   :  { %v695_v9 = vpack.c.bf16 %v36_v6, %v35_v3  ;;  %v54_v10 = vld [vmem:[%s1026_s0 + $0x98] sm:$0xff]  ;;  %v37_v12 = vld [vmem:[%s1026_s0 + $0x10] sm:$0xff]  ;;  %v55_v14 = vld [vmem:[%s1026_s0 + $0xa0] sm:$0xff] }
   0x6   :  { %694 = vmatprep.subr.msk.bf16.mxu0 %vm850_vm1, %v692_v4  ;;  %v698_v11 = vpack.c.bf16 %v54_v10, %v53_v7  ;;  %v38_v13 = vld [vmem:[%s1026_s0 + $0x18] sm:$0xff]  ;;  %v56_v15 = vld [vmem:[%s1026_s0 + $0xa8] sm:$0xff]  ;;  %v67_v18 = vld [vmem:[%s1027_s1] sm:$0x1f] }
   0x7   :  { %697 = vmatpush3.bf16.xpose.msk.msra.mxu0 %vm850_vm1, %v695_v9  ;;  %v701_v16 = vpack.c.bf16 %v38_v13, %v37_v12  ;;  %v704_v17 = vpack.c.bf16 %v56_v15, %v55_v14  ;;  %v68_v19 = vld [vmem:[%s1028_s2] sm:$0x1f]  ;;  %690 = vmatprep.mubr.msk.f32.mxu0 %vm74_vm0, %v67_v18 }
   0x8   :  { %700 = vmatprep.subr.msk.bf16.mxu0 %vm850_vm1, %v698_v11 }
   0xf   :  { %703 = vmatpush3.bf16.xpose.msk.msra.mxu0 %vm850_vm1, %v701_v16 }
  0x10   :  { %16 = vsyncpa [#allocation4], 0  ;;  %706 = vmatprep.subr.msk.bf16.mxu0 %vm850_vm1, %v704_v17  ;;  %v39_v20 = vld [vmem:[%s1026_s0 + $0x20] sm:$0xff]  ;;  %v40_v21 = vld [vmem:[%s1026_s0 + $0x28] sm:$0xff]  ;;  %71 = vperm.xlu0 %755, %v68_v19   ;;  %v782_v56 = vmov 0.0   ;;  %vm268_vm2 = vcmask 1044480  }
  0x11   :  { %v57_v22 = vld [vmem:[%s1026_s0 + $0xb0] sm:$0xff]  ;;  %v58_v23 = vld [vmem:[%s1026_s0 + $0xb8] sm:$0xff]  ;;  %v249_v24 = vld [vmem:[%s1030_s4] sm:$0xff]  ;;  %v707_v25 = vpack.c.bf16 %v40_v21, %v39_v20  ;;  %339 = vmatprep.mubr.f32.mxu1 %v782_v56  ;;  %vm261_vm3 = vcmask 39936   ;;  %vm387_vm4 = vcmask 1041408   ;;  %vm783_vm5 = vmmov 1  }
  0x12   :  { %v710_v26 = vpack.c.bf16 %v58_v23, %v57_v22  ;;  %v360_v27 = vld [vmem:[%s1032_s6 + $0x8] sm:$0xff]  ;;  %v41_v28 = vld [vmem:[%s1026_s0 + $0x30] sm:$0xff]  ;;  %v42_v29 = vld [vmem:[%s1026_s0 + $0x38] sm:$0xff]  ;;  %vm377_vm7 = vcmask 80896   ;;  %vm498_vm8 = vcmask 1043456   ;;  %vm494_vm9 = vcmask 162816  }
  0x13   :  { %v59_v30 = vld [vmem:[%s1026_s0 + $0xc0] sm:$0xff]  ;;  %v60_v31 = vld [vmem:[%s1026_s0 + $0xc8] sm:$0xff]  ;;  %v713_v33 = vpack.c.bf16 %v42_v29, %v41_v28  ;;  %v61_v37 = vld [vmem:[%s1026_s0 + $0xd0] sm:$0xff]  ;;  %s785_s23 = smov [#allocation3]  }
  0x14   :  { %253 = vperm.xlu0 %755, %v249_v24   ;;  %v484_v32 = vld [vmem:[#allocation2] sm:$0x1]  ;;  %v716_v34 = vpack.c.bf16 %v60_v31, %v59_v30  ;;  %v44_v36 = vld [vmem:[%s1026_s0 + $0x48] sm:$0xff]  ;;  %v62_v38 = vld [vmem:[%s1026_s0 + $0xd8] sm:$0xff]  ;;  %s605_s24 = sshll.u32 %s785_s23, 4  ;;  %s606_s24 = int_to_ptr.vmem [resolvable:$true] %s605_s24 }
  0x15   :  { %v43_v35 = vld [vmem:[%s1026_s0 + $0x40] sm:$0xff]  ;;  %v722_v40 = vpack.c.bf16 %v62_v38, %v61_v37  ;;  %v45_v41 = vld [vmem:[%s1026_s0 + $0x50] sm:$0xff]  ;;  %v46_v42 = vld [vmem:[%s1026_s0 + $0x58] sm:$0xff]  ;;  %p762_p1 = scmp.lt.s32.totalorder %s606_s24, %s606_s24 }
  0x16   :  { %v719_v39 = vpack.c.bf16 %v44_v36, %v43_v35  ;;  %v63_v43 = vld [vmem:[%s1026_s0 + $0xe0] sm:$0xff]  ;;  %v64_v44 = vld [vmem:[%s1026_s0 + $0xe8] sm:$0xff]  ;;  %v725_v45 = vpack.c.bf16 %v46_v42, %v45_v41  ;;  %v65_v49 = vld [vmem:[%s1026_s0 + $0xf0] sm:$0xff] }
  0x17   :  { %709 = vmatpush3.bf16.xpose.msk.msra.mxu0 %vm850_vm1, %v707_v25  ;;  %v728_v46 = vpack.c.bf16 %v64_v44, %v63_v43  ;;  %v47_v47 = vld [vmem:[%s1026_s0 + $0x60] sm:$0xff]  ;;  %v48_v48 = vld [vmem:[%s1026_s0 + $0x68] sm:$0xff]  ;;  %v66_v50 = vld [vmem:[%s1026_s0 + $0xf8] sm:$0xff] }
  0x18   :  { %712 = vmatprep.subr.msk.bf16.mxu0 %vm850_vm1, %v710_v26  ;;  %369 = vperm.xlu0 %755, %v360_v27   ;;  %v731_v51 = vpack.c.bf16 %v48_v48, %v47_v47  ;;  %v734_v52 = vpack.c.bf16 %v66_v50, %v65_v49  ;;  %v49_v53 = vld [vmem:[%s1026_s0 + $0x70] sm:$0xff]  ;;  %v50_v54 = vld [vmem:[%s1026_s0 + $0x78] sm:$0xff]  ;;  %v250_v57 = vld [vmem:[%s1030_s4 + $0x8] sm:$0x3]  ;;  %v490_v48 = vlaneseq  ;;  %v784_v50 = vmov 1966171168  }
  0x19   :  { %v737_v55 = vpack.c.bf16 %v50_v54, %v49_v53  ;;  %258 = vperm.xlu1 %756, %v250_v57   ;;  %v359_v58 = vld [vmem:[%s1032_s6] sm:$0xff]  ;;  %v361_v59 = vld [vmem:[%s1032_s6 + $0x10] sm:$0xf]  ;;  %v248_v4 = vld [vmem:[%s1029_s3 + $0x8] sm:$0x3] }
  0x1a   :  { %v247_v3 = vld [vmem:[%s1029_s3] sm:$0xff]  ;;  %vm741_vm6 = vmpackc.low %vm387_vm4, %vm783_vm5  ;;  %v357_v22 = vld [vmem:[%s1031_s5 + $0x8] sm:$0xff]  ;;  %v491_v49 = vshrl.u32 %v490_v48, 7  ;;  %vm596_vm10 = vcmp.lt.s32.totalorder %v490_v48, 256 }
  0x1b   :  { %v356_v21 = vld [vmem:[%s1031_s5] sm:$0xff]  ;;  %v358_v23 = vld [vmem:[%s1031_s5 + $0x10] sm:$0xf] }
  0x1c   :  { %487 = vperm.xlu0 %755, %v484_v32   ;;  %v483_v47 = vld [vmem:[%s1033_s7] sm:$0x1]  ;;  %s757_s7 = scalar_lea.vmem %s606_s24, 32 }
  0x1d   :  { %364 = vperm.xlu1 %756, %v359_v58   ;;  %p758_p0 = scmp.ne.s32.totalorder %s606_s24, %s757_s7  ;;  %p763_p2 = scmp.lt.s32.totalorder %s757_s7, %s757_s7 }
  0x1f   :  { %715 = vmatpush3.bf16.xpose.msk.msra.mxu0 %vm850_vm1, %v713_v33  ;;  %p764_p3 = por %p763_p2, %p762_p1 }
  0x20   :  { %718 = vmatprep.subr.msk.bf16.mxu0 %vm850_vm1, %v716_v34 }
  0x21   :  { %374 = vperm.xlu1 %756, %v361_v59   ;;  %p765_p4 = pnand %p764_p3, %p758_p0 }
  0x27   :  { %721 = vmatpush3.bf16.xpose.msk.msra.mxu0 %vm850_vm1, %v719_v39 }
  0x28   :  { %724 = vmatprep.subr.msk.bf16.mxu0 %vm850_vm1, %v722_v40 }
  0x2f   :  { %727 = vmatpush3.bf16.xpose.msk.msra.mxu0 %vm850_vm1, %v725_v45 }
  0x30   :  { %730 = vmatprep.subr.msk.bf16.mxu0 %vm850_vm1, %v728_v46 }
  0x37   :  { %733 = vmatpush3.bf16.xpose.msk.msra.mxu0 %vm850_vm1, %v731_v51  ;;  %v580_v51 = vunpack.c.l.s4 %v784_v50 }
  0x38   :  { %736 = vmatprep.subr.msk.bf16.mxu0 %vm850_vm1, %v734_v52  ;;  %v492_v52 = vsub.s32 0, %v491_v49 }
  0x39   :  { %v581_v54 = vunpack.c.0.s8 %v580_v51 }
  0x3f   :  { %739 = vmatpush3.bf16.xpose.msk.msra.mxu0 %vm850_vm1, %v737_v55 }
  0x46   :  { %691 = vmatmul.mubr.msk.f32.vlgmr.msra.gmra.mrb[0].mxu0 %vm74_vm0, %v67_v18 }
  0x8f   :  { %v72_v60 = vpop.permute.xlu0 %71 }
  0x93   :  { %v254_v7 = vpop.permute.xlu0 %253 }
  0x97   :  { %v370_v28 = vpop.permute.xlu0 %369 }
  0x98   :  { %v259_v9 = vpop.permute.xlu1 %258 }
  0x9b   :  { %v488_v53 = vpop.permute.xlu0 %487 }
  0x9c   :  { %v365_v26 = vpop.permute.xlu1 %364  ;;  %v493_v55 = vrot.slane %v488_v53, %v492_v52 }
  0xa0   :  { %v375_v39 = vpop.permute.xlu1 %374 }
 0x119   :  { %v240_v61 = vpop.f32.mrb[0].mxu0 }
 0x11a   :  { %v241_v62 = vadd.f32 %v240_v61, %v72_v60  ;;  %v242_v63 = vpop.f32.mrb[1].mxu0 }
 0x11b   :  { %v243_v0 = vadd.f32 %v242_v63, %v72_v60  ;;  %v584_v60 = vsub.s32 %v581_v54, %v491_v49 }
 0x11c   :  { %v245_v2 = vmax.f32 %v241_v62, 0.0 }
 0x11d   :  { %v246_v1 = vmax.f32 %v243_v0, 0.0 }
 0x11f   :  { %646 = vmatprep.subr.msk.mxu1 %vm268_vm2, %v246_v1 }
 0x120   :  { %647 = vmatpush1.msk.msra.mxu1 %vm268_vm2, %v245_v2 }
 0x121   :  { %648 = vmatmul.mubr.msk.f32.vlgmr.msra.gmra.mrb[0].mxu1 %vm261_vm3, %v247_v3 }
 0x122   :  { %345 = vmatprep.mubr.f32.mxu1 %v782_v56 }
 0x125   :  { %649 = vmatmul.mubr.msk.f32.gmra.mrb[2].mxu1 %vm261_vm3, %v248_v4 }
 0x126   :  { %458 = vmatprep.mubr.f32.mxu1 %v782_v56 }
 0x1f4   :  { %v341_v5 = vpop.f32.mrb[0].mxu1 }
 0x1f5   :  { %v343_v6 = vpop.f32.mrb[1].mxu1  ;;  %v342_v8 = vadd.f32 %v341_v5, %v254_v7 }
 0x1f6   :  { %v344_v10 = vadd.f32 %v343_v6, %v254_v7 }
 0x1f7   :  { %v352_v15 = vmax.f32 %v342_v8, 0.0 }
 0x1f8   :  { %v347_v11 = vpop.f32.mrb[2].mxu1  ;;  %v353_v17 = vmax.f32 %v344_v10, 0.0 }
 0x1f9   :  { %v348_v12 = vadd.f32 %v347_v11, %v259_v9  ;;  %v349_v13 = vpop.f32.mrb[3].mxu1 }
 0x1fa   :  { %v350_v14 = vadd.f32 %v349_v13, %v259_v9 }
 0x1fb   :  { %v354_v16 = vmax.f32 %v348_v12, 0.0 }
 0x1fc   :  { %v355_v18 = vmax.f32 %v350_v14, 0.0 }
 0x1fd   :  { %v743_v19 = vpack.c.bf16 %v354_v16, %v352_v15 }
 0x1fe   :  { %v740_v20 = vpack.c.bf16 %v355_v18, %v353_v17 }
 0x200   :  { %742 = vmatprep.subr.msk.bf16.mxu1 %vm741_vm6, %v740_v20 }
 0x201   :  { %745 = vmatpush1.bf16.msk.msra.mxu1 %vm741_vm6, %v743_v19 }
 0x204   :  { %652 = vmatmul.mubr.msk.f32.vlgmr.msra.gmra.mrb[4].mxu1 %vm377_vm7, %v356_v21 }
 0x205   :  { %464 = vmatprep.mubr.f32.mxu1 %v782_v56 }
 0x208   :  { %653 = vmatmul.mubr.msk.f32.gmra.mrb[6].mxu1 %vm377_vm7, %v357_v22 }
 0x209   :  { %470 = vmatprep.mubr.f32.mxu1 %v782_v56 }
 0x20c   :  { %654 = vmatmul.mubr.msk.f32.gmra.mrb[8].mxu1 %vm377_vm7, %v358_v23 }
 0x20d   :  { %569 = vmatprep.mubr.f32.mxu1 %v782_v56 }
 0x2d7   :  { %v460_v24 = vpop.f32.mrb[4].mxu1 }
 0x2d8   :  { %v462_v25 = vpop.f32.mrb[5].mxu1  ;;  %v461_v27 = vadd.f32 %v460_v24, %v365_v26 }
 0x2d9   :  { %v463_v29 = vadd.f32 %v462_v25, %v365_v26 }
 0x2da   :  { %v477_v34 = vmax.f32 %v461_v27, 0.0 }
 0x2db   :  { %v466_v30 = vpop.f32.mrb[6].mxu1  ;;  %v478_v36 = vmax.f32 %v463_v29, 0.0 }
 0x2dc   :  { %v467_v31 = vadd.f32 %v466_v30, %v370_v28  ;;  %v468_v32 = vpop.f32.mrb[7].mxu1 }
 0x2dd   :  { %v469_v33 = vadd.f32 %v468_v32, %v370_v28 }
 0x2de   :  { %v479_v35 = vmax.f32 %v467_v31, 0.0 }
 0x2df   :  { %v480_v37 = vmax.f32 %v469_v33, 0.0  ;;  %v472_v38 = vpop.f32.mrb[8].mxu1 }
 0x2e0   :  { %v748_v40 = vpack.c.bf16 %v479_v35, %v477_v34  ;;  %v474_v41 = vpop.f32.mrb[9].mxu1  ;;  %v473_v44 = vadd.f32 %v472_v38, %v375_v39 }
 0x2e1   :  { %v746_v42 = vpack.c.bf16 %v480_v37, %v478_v36  ;;  %v475_v43 = vadd.f32 %v474_v41, %v375_v39 }
 0x2e2   :  { %v481_v46 = vmax.f32 %v473_v44, 0.0 }
 0x2e3   :  { %v482_v45 = vmax.f32 %v475_v43, 0.0  ;;  %747 = vmatprep.subr.bf16.mxu1 %v746_v42 }
 0x2e4   :  { %749 = vmatpush1.bf16.msra.mxu1 %v748_v40 }
 0x2e5   :  { %655 = vmatprep.subr.msk.mxu1 %vm498_vm8, %v482_v45 }
 0x2e8   :  { %656 = vmatpush1.msk.msra.mxu1 %vm498_vm8, %v481_v46 }
 0x2e9   :  { %657 = vmatmul.mubr.msk.f32.vlgmr.msra.gmra.mrb[10].mxu1 %vm494_vm9, %v483_v47 }
 0x3bc   :  { %v571_v56 = vpop.f32.mrb[10].mxu1 }
 0x3bd   :  { %v572_v57 = vadd.f32 %v571_v56, %v493_v55  ;;  %v573_v58 = vpop.f32.mrb[11].mxu1 }
 0x3be   :  { %v574_v59 = vadd.f32 %v573_v58, %v493_v55 }
 0x3c0   :  { %v578_v61 = vcombine.low %v572_v57, %v574_v59 }
 0x3c2   :  { %v585_v62 = vrot.slane %v578_v61, %v584_v60 }
 0x3c4   :  { %v592_v63 = vrot.slane %v585_v62, %v584_v60 }
 0x3c6   :  { %598 = vst.msk [vmem:[#allocation3] sm:$0x3] %vm596_vm10, %v592_v63 }
 0x3c7   :  { %768 = shalt.err (!%p765_p4)
}
 0x3c8   :  { %s769_s27 = scalar_lea.hbm %s1035_s9, 32 }
 0x3c9   :  { %p770_p5 = scmp.ne.s32.totalorder %s1035_s9, %s769_s27  ;;  %p773_p6 = scmp.lt.u32.totalorder %s769_s27, %s1035_s9 }
 0x3cb   :  { %p775_p7 = pnand %p773_p6, %p770_p5 }
 0x3cd   :  { %778 = shalt.err (!%p775_p7)
}
 0x3ce   :  { %608 = dma.vmem_to_hbm [thread:$0]  %s606_s24, 32, %s1035_s9, [#allocation4]  }
 0x3cf   :  { %779 = dma.done.wait [#allocation4], 32  }
 0x3d0   :  { %780 = vsyncadd [#allocation4], 4294967264 }
 0x3d1   :  { %612 = vsyncpa [#allocation4], 1 }

</bundles_post_ra>
